<compile_context>
chip_gen: v7x
topology: tpu7x:2x2x1
jax: 0.10.0
libtpu: 0.0.40
codegen_flags: <defaults>
</compile_context>

<pallas_src>
import functools

import jax
import jax.numpy as jnp
from jax import lax
from jax.experimental import pallas as pl
from jax.experimental.pallas import tpu as pltpu

LANE = 128
SUBLANE = 8


def _round_up(x, m):
    return ((x + m - 1) // m) * m


# ----------------------------------------------------------------------------
# Pallas kernel: one invocation processes one batch tile through ALL L layers.
# ----------------------------------------------------------------------------
def flow_kernel(z_ref, w1_ref, b1_ref, w2s_ref, b2s_ref, w2t_ref, b2t_ref,
                x_ref, ld_ref,
                *, num_layers, hidden_pad, unroll, bf16_hidden):
    z0 = z_ref[...].astype(jnp.float32)                  # (TB, Dp) carried state
    ld0 = jnp.zeros((z0.shape[0], 1), jnp.float32)       # running log|det J|

    def layer(l, carry):
        z, ld = carry
        zb = z.astype(jnp.bfloat16)                       # bf16 MXU operand
        # fused first matmul: hidden = [h_s | h_t]  (mask folded into W1 rows)
        h_acc = (jnp.dot(zb, w1_ref[l], preferred_element_type=jnp.float32)
                 + b1_ref[l])
        if bf16_hidden:
            # v6e/v7x: bf16 EUP tanh (2x packed), feeds the MXU directly.
            hb = jnp.tanh(h_acc.astype(jnp.bfloat16))
        else:
            # v5e-safe: f32 EUP tanh, then cast for the MXU.
            hb = jnp.tanh(h_acc).astype(jnp.bfloat16)
        # lane-aligned split of the hidden (each half padded to 128 lanes)
        hs = hb[:, :hidden_pad]
        ht = hb[:, hidden_pad:]
        # two dense second GEMMs (no block-diagonal structural zeros);
        # (1-m) folded into the output columns, so s,t are exactly 0 on
        # masked/padded dims.
        s = jnp.tanh(jnp.dot(hs, w2s_ref[l],
                             preferred_element_type=jnp.float32) + b2s_ref[l])
        t = (jnp.dot(ht, w2t_ref[l],
                     preferred_element_type=jnp.float32) + b2t_ref[l])
        z_new = z * jnp.exp(s) + t                        # exp(0)=1 => identity on masked dims
        ld_new = ld + jnp.sum(s, axis=-1, keepdims=True)
        return z_new, ld_new

    z_f, ld_f = lax.fori_loop(0, num_layers, layer, (z0, ld0), unroll=unroll)

    x_ref[...] = z_f.astype(x_ref.dtype)
    # small (TB, 8) log-det block (batch rows sliced in the wrapper; padded
    # batch rows carry garbage ld and are dropped there).
    ld_ref[...] = jnp.broadcast_to(ld_f, ld_ref.shape)


# ----------------------------------------------------------------------------
# Host-side parameter packing (fusion + masking + per-half lane padding + bf16).
# ----------------------------------------------------------------------------
def pack_params(params):
    masks, w1, b1, w2, b2, v1, c1, v2, c2 = params
    L, D, H = w1.shape
    Dp = _round_up(D, LANE)
    Hp = _round_up(H, LANE)          # each hidden half padded separately

    m = masks.astype(jnp.float32)    # (L, D)
    # Mask folding is exact only for strictly 0/1 masks.
    assert bool(jnp.all((m == 0.0) | (m == 1.0))), "masks must be binary 0/1"
    om = 1.0 - m

    f32 = jnp.float32
    # First matmul: [w1 | v1], conditioning mask folded into the rows; halves
    # live at lane offsets [0, Hp) and [Hp, 2Hp).
    w1f = jnp.zeros((L, Dp, 2 * Hp), f32)
    w1f = w1f.at[:, :D, :H].set(w1 * m[:, :, None])
    w1f = w1f.at[:, :D, Hp:Hp + H].set(v1 * m[:, :, None])
    b1f = jnp.zeros((L, 1, 2 * Hp), f32)
    b1f = b1f.at[:, :, :H].set(b1)
    b1f = b1f.at[:, :, Hp:Hp + H].set(c1)

    # Second matmuls: dense per-half weights ((1-m) folded into the columns;
    # tanh(0)=0 keeps s exactly zero on masked/padded dims).
    w2s = jnp.zeros((L, Hp, Dp), f32).at[:, :H, :D].set(w2 * om[:, None, :])
    b2s = jnp.zeros((L, 1, Dp), f32).at[:, :, :D].set(b2 * om[:, None, :])
    w2t = jnp.zeros((L, Hp, Dp), f32).at[:, :H, :D].set(v2 * om[:, None, :])
    b2t = jnp.zeros((L, 1, Dp), f32).at[:, :, :D].set(c2 * om[:, None, :])

    # Weights bf16 (MXU operands); biases stay f32 (added post-accumulation).
    return (w1f.astype(jnp.bfloat16), b1f,
            w2s.astype(jnp.bfloat16), b2s,
            w2t.astype(jnp.bfloat16), b2t)


def _choose_tb(bp0):
    """Batch tile: >=2 tiles (v7x megacore) when batch allows, capped at 256."""
    if bp0 < 2 * SUBLANE:
        return bp0
    half = _round_up((bp0 + 1) // 2, SUBLANE)
    return min(256, half)


# ----------------------------------------------------------------------------
# Wrapper
# ----------------------------------------------------------------------------
@functools.partial(jax.jit, static_argnames=("tb", "bf16_hidden"))
def flow_forward(z, packed, *, tb=None, bf16_hidden=False):
    """Flow.forward: z -> (x, sum_log_det_J)."""
    w1f, b1f, w2s, b2s, w2t, b2t = packed
    B, D = z.shape
    L, Dp, Hf2 = w1f.shape
    Hp = Hf2 // 2

    Bp0 = _round_up(B, SUBLANE)
    TB = _round_up(tb, SUBLANE) if tb is not None else _choose_tb(Bp0)
    Bp = _round_up(Bp0, TB)

    zp = jnp.zeros((Bp, Dp), z.dtype).at[:B, :D].set(z)

    unroll = L if L <= 8 else 4           # partial unroll for deep flows
    kern = functools.partial(flow_kernel, num_layers=L, hidden_pad=Hp,
                             unroll=unroll, bf16_hidden=bf16_hidden)

    # Resident weights: full (L, ...) blocks with a constant index map -> one
    # DMA, kept in VMEM across the whole batch grid.
    def resident(arr):
        return pl.BlockSpec(arr.shape, lambda b: (0, 0, 0))

    # Explicit VMEM budget (leave headroom; weights may be double-buffered by
    # the pipeliner even though their window never changes).
    itemsize = jnp.dtype(z.dtype).itemsize
    weight_bytes = ((w1f.size + w2s.size + w2t.size) * 2
                    + (b1f.size + b2s.size + b2t.size) * 4)
    io_bytes = 2 * 2 * TB * Dp * itemsize + 2 * TB * 8 * 4
    live_bytes = 4 * TB * (2 * Hp + 4 * Dp)
    needed = 2 * weight_bytes + io_bytes + live_bytes
    vmem_limit = int(min(max(needed + (8 << 20), 32 << 20), 48 << 20))
    # TODO(synk): stream per-layer weights (grid axis over L / emit_pipeline)
    # when 2*weight_bytes approaches the 48 MiB clamp (v7x VMEM = 64 MiB).

    x_pad, ld_pad = pl.pallas_call(
        kern,
        out_shape=(
            jax.ShapeDtypeStruct((Bp, Dp), z.dtype),
            jax.ShapeDtypeStruct((Bp, 8), jnp.float32),
        ),
        grid=(Bp // TB,),
        in_specs=[
            pl.BlockSpec((TB, Dp), lambda b: (b, 0)),   # z batch tile
            resident(w1f), resident(b1f),               # (L, Dp, 2Hp) / (L,1,2Hp)
            resident(w2s), resident(b2s),               # (L, Hp, Dp)  / (L,1,Dp)
            resident(w2t), resident(b2t),               # (L, Hp, Dp)  / (L,1,Dp)
        ],
        out_specs=(
            pl.BlockSpec((TB, Dp), lambda b: (b, 0)),
            pl.BlockSpec((TB, 8), lambda b: (b, 0)),
        ),
        compiler_params=pltpu.CompilerParams(
            dimension_semantics=("parallel",),
            vmem_limit_bytes=vmem_limit),
    )(zp, w1f, b1f, w2s, b2s, w2t, b2t)

    return x_pad[:B, :D], ld_pad[:B, 0]


# ----------------------------------------------------------------------------
# Pure-JAX reference on the ORIGINAL (unfused, unpadded) parameters, using the
# same precision policy (bf16 MXU operands, f32 accumulation / elementwise).
# ----------------------------------------------------------------------------
def flow_forward_ref(z, params):
    masks, w1, b1, w2, b2, v1, c1, v2, c2 = params
    L = w1.shape[0]
    bf = jnp.bfloat16
    zc = z.astype(jnp.float32)
    ld = jnp.zeros((z.shape[0],), jnp.float32)
    for l in range(L):
        m = masks[l][None, :]
        zm = zc * m
        hs = jnp.tanh(jnp.dot(zm.astype(bf), w1[l].astype(bf),
                              preferred_element_type=jnp.float32) + b1[l])
        s = jnp.tanh(jnp.dot(hs.astype(bf), w2[l].astype(bf),
                             preferred_element_type=jnp.float32) + b2[l]) * (1.0 - m)
        ht = jnp.tanh(jnp.dot(zm.astype(bf), v1[l].astype(bf),
                              preferred_element_type=jnp.float32) + c1[l])
        t = (jnp.dot(ht.astype(bf), v2[l].astype(bf),
                     preferred_element_type=jnp.float32) + c2[l]) * (1.0 - m)
        zc = zm + (1.0 - m) * (zc * jnp.exp(s) + t)
        ld = ld + jnp.sum(s, axis=-1)
    return zc.astype(z.dtype), ld


def init_params(key, L, D, H):
    ks = jax.random.split(key, 8)
    scale = 0.3
    w1 = scale * jax.random.normal(ks[0], (L, D, H), jnp.float32)
    b1 = scale * jax.random.normal(ks[1], (L, 1, H), jnp.float32)
    w2 = scale * jax.random.normal(ks[2], (L, H, D), jnp.float32)
    b2 = scale * jax.random.normal(ks[3], (L, 1, D), jnp.float32)
    v1 = scale * jax.random.normal(ks[4], (L, D, H), jnp.float32)
    c1 = scale * jax.random.normal(ks[5], (L, 1, H), jnp.float32)
    v2 = scale * jax.random.normal(ks[6], (L, H, D), jnp.float32)
    c2 = scale * jax.random.normal(ks[7], (L, 1, D), jnp.float32)
    # alternating binary masks, flipped every layer
    base_mask = (jnp.arange(D) % 2).astype(jnp.float32)
    masks = jnp.stack([base_mask if l % 2 == 0 else 1.0 - base_mask
                       for l in range(L)], axis=0)
    return (masks, w1, b1, w2, b2, v1, c1, v2, c2)


def _check(z, params, packed, tol):
    x, ld = flow_forward(z, packed)
    jax.block_until_ready((x, ld))
    x_ref, ld_ref = flow_forward_ref(z, params)
    assert x.shape == z.shape and ld.shape == (z.shape[0],)
    # Tolerance accounts for rare bf16 rounding-boundary flips of the hidden
    # tanh (kernel EUP tanh vs XLA tanh); structural errors would be O(0.1+).
    assert jnp.allclose(x, x_ref, atol=tol, rtol=tol), "x mismatch"
    assert jnp.allclose(ld, ld_ref, atol=tol, rtol=tol), "log_det mismatch"


if __name__ == "__main__":
    # TODO(synk): base-distribution log_prob / inverse / sample / loss are not
    # part of Flow.forward and are not implemented here.
    key = jax.random.PRNGKey(0)
    kz1, kz2, kp = jax.random.split(key, 3)

    B, D, H, L = 8, 16, 32, 4
    params = init_params(kp, L, D, H)
    packed = pack_params(params)

    # single-tile demo batch
    z1 = jax.random.normal(kz1, (B, D), jnp.float32)
    _check(z1, params, packed, tol=1e-2)

    # larger batch -> >=2 batch tiles (exercises the "parallel" grid axis that
    # a v7x megacore splits across both TensorCores)
    z2 = jax.random.normal(kz2, (64, D), jnp.float32)
    _check(z2, params, packed, tol=1e-2)

    print("KERNEL_OK")
</pallas_src>

<mosaic_0001>
module attributes {stable_mosaic.version = 11 : i64} {
  func.func @flow_kernel(%arg0: i32, %arg1: memref<8x128xf32, #tpu.memory_space<vmem>>, %arg2: memref<4x128x256xbf16, #tpu.memory_space<vmem>>, %arg3: memref<4x1x256xf32, #tpu.memory_space<vmem>>, %arg4: memref<4x128x128xbf16, #tpu.memory_space<vmem>>, %arg5: memref<4x1x128xf32, #tpu.memory_space<vmem>>, %arg6: memref<4x128x128xbf16, #tpu.memory_space<vmem>>, %arg7: memref<4x1x128xf32, #tpu.memory_space<vmem>>, %arg8: memref<8x128xf32, #tpu.memory_space<vmem>>, %arg9: memref<8x8xf32, #tpu.memory_space<vmem>>) attributes {dimension_semantics = [#tpu.dimension_semantics<parallel>], iteration_bounds = array<i64: 1>, scalar_prefetch = 0 : i64, scratch_operands = 0 : i64, tpu.core_type = #tpu.core_type<tc>, window_params = [{transform_indices = @transform_0, window_bounds = array<i64: 8, 128>}, {pipeline_mode = #tpu.pipeline_mode<synchronous>, transform_indices = @transform_1, window_bounds = array<i64: 4, 128, 256>}, {pipeline_mode = #tpu.pipeline_mode<synchronous>, transform_indices = @transform_2, window_bounds = array<i64: 4, 1, 256>}, {pipeline_mode = #tpu.pipeline_mode<synchronous>, transform_indices = @transform_3, window_bounds = array<i64: 4, 128, 128>}, {pipeline_mode = #tpu.pipeline_mode<synchronous>, transform_indices = @transform_4, window_bounds = array<i64: 4, 1, 128>}, {pipeline_mode = #tpu.pipeline_mode<synchronous>, transform_indices = @transform_5, window_bounds = array<i64: 4, 128, 128>}, {pipeline_mode = #tpu.pipeline_mode<synchronous>, transform_indices = @transform_6, window_bounds = array<i64: 4, 1, 128>}, {transform_indices = @transform_7, window_bounds = array<i64: 8, 128>}, {transform_indices = @transform_8, window_bounds = array<i64: 8, 8>}]} {
    %c0 = arith.constant 0 : index
    %c0_0 = arith.constant 0 : index
    %0 = vector.load %arg1[%c0, %c0_0] : memref<8x128xf32, #tpu.memory_space<vmem>>, vector<8x128xf32>
    %cst = arith.constant 0.000000e+00 : f32
    %1 = vector.broadcast %cst : f32 to vector<8x1xf32>
    %c0_i32 = arith.constant 0 : i32
    %2 = arith.truncf %0 : vector<8x128xf32> to vector<8x128xbf16>
    %3 = arith.index_cast %c0_i32 : i32 to index
    %c0_1 = arith.constant 0 : index
    %c0_2 = arith.constant 0 : index
    %4 = vector.load %arg2[%3, %c0_1, %c0_2] : memref<4x128x256xbf16, #tpu.memory_space<vmem>>, vector<1x128x256xbf16>
    %5 = vector.shape_cast %4 : vector<1x128x256xbf16> to vector<128x256xbf16>
    %cst_3 = arith.constant dense<0.000000e+00> : vector<8x256xf32>
    %6 = tpu.matmul %2, %5, %cst_3 {dimension_numbers = #tpu.dot_dimension_numbers<[1], [0], [0], [1], [0, 0, 1, 1], [], []>} : vector<8x128xbf16>, vector<128x256xbf16>, vector<8x256xf32> -> vector<8x256xf32>
    %7 = arith.index_cast %c0_i32 : i32 to index
    %c0_4 = arith.constant 0 : index
    %c0_5 = arith.constant 0 : index
    %8 = vector.load %arg3[%7, %c0_4, %c0_5] : memref<4x1x256xf32, #tpu.memory_space<vmem>>, vector<1x1x256xf32>
    %9 = vector.shape_cast %8 : vector<1x1x256xf32> to vector<1x256xf32>
    %10 = vector.broadcast %9 : vector<1x256xf32> to vector<8x256xf32>
    %11 = arith.addf %6, %10 : vector<8x256xf32>
    %12 = math.tanh %11 : vector<8x256xf32>
    %13 = arith.truncf %12 : vector<8x256xf32> to vector<8x256xbf16>
    %14 = vector.extract_strided_slice %13 {offsets = [0, 0], sizes = [8, 128], strides = [1, 1]} : vector<8x256xbf16> to vector<8x128xbf16>
    %15 = vector.extract_strided_slice %13 {offsets = [0, 128], sizes = [8, 128], strides = [1, 1]} : vector<8x256xbf16> to vector<8x128xbf16>
    %16 = arith.index_cast %c0_i32 : i32 to index
    %c0_6 = arith.constant 0 : index
    %c0_7 = arith.constant 0 : index
    %17 = vector.load %arg4[%16, %c0_6, %c0_7] : memref<4x128x128xbf16, #tpu.memory_space<vmem>>, vector<1x128x128xbf16>
    %18 = vector.shape_cast %17 : vector<1x128x128xbf16> to vector<128x128xbf16>
    %cst_8 = arith.constant dense<0.000000e+00> : vector<8x128xf32>
    %19 = tpu.matmul %14, %18, %cst_8 {dimension_numbers = #tpu.dot_dimension_numbers<[1], [0], [0], [1], [0, 0, 1, 1], [], []>} : vector<8x128xbf16>, vector<128x128xbf16>, vector<8x128xf32> -> vector<8x128xf32>
    %20 = arith.index_cast %c0_i32 : i32 to index
    %c0_9 = arith.constant 0 : index
    %c0_10 = arith.constant 0 : index
    %21 = vector.load %arg5[%20, %c0_9, %c0_10] : memref<4x1x128xf32, #tpu.memory_space<vmem>>, vector<1x1x128xf32>
    %22 = vector.shape_cast %21 : vector<1x1x128xf32> to vector<1x128xf32>
    %23 = vector.broadcast %22 : vector<1x128xf32> to vector<8x128xf32>
    %24 = arith.addf %19, %23 : vector<8x128xf32>
    %25 = math.tanh %24 : vector<8x128xf32>
    %26 = arith.index_cast %c0_i32 : i32 to index
    %c0_11 = arith.constant 0 : index
    %c0_12 = arith.constant 0 : index
    %27 = vector.load %arg6[%26, %c0_11, %c0_12] : memref<4x128x128xbf16, #tpu.memory_space<vmem>>, vector<1x128x128xbf16>
    %28 = vector.shape_cast %27 : vector<1x128x128xbf16> to vector<128x128xbf16>
    %cst_13 = arith.constant dense<0.000000e+00> : vector<8x128xf32>
    %29 = tpu.matmul %15, %28, %cst_13 {dimension_numbers = #tpu.dot_dimension_numbers<[1], [0], [0], [1], [0, 0, 1, 1], [], []>} : vector<8x128xbf16>, vector<128x128xbf16>, vector<8x128xf32> -> vector<8x128xf32>
    %30 = arith.index_cast %c0_i32 : i32 to index
    %c0_14 = arith.constant 0 : index
    %c0_15 = arith.constant 0 : index
    %31 = vector.load %arg7[%30, %c0_14, %c0_15] : memref<4x1x128xf32, #tpu.memory_space<vmem>>, vector<1x1x128xf32>
    %32 = vector.shape_cast %31 : vector<1x1x128xf32> to vector<1x128xf32>
    %33 = vector.broadcast %32 : vector<1x128xf32> to vector<8x128xf32>
    %34 = arith.addf %29, %33 : vector<8x128xf32>
    %35 = math.exp %25 : vector<8x128xf32>
    %36 = arith.mulf %0, %35 : vector<8x128xf32>
    %37 = arith.addf %36, %34 : vector<8x128xf32>
    %cst_16 = arith.constant dense<0.000000e+00> : vector<8xf32>
    %38 = vector.multi_reduction <add>, %25, %cst_16 [1] : vector<8x128xf32> to vector<8xf32>
    %39 = vector.shape_cast %38 : vector<8xf32> to vector<8x1xf32>
    %40 = arith.addf %1, %39 : vector<8x1xf32>
    %c1_i32 = arith.constant 1 : i32
    %41 = arith.truncf %37 : vector<8x128xf32> to vector<8x128xbf16>
    %42 = arith.index_cast %c1_i32 : i32 to index
    %c0_17 = arith.constant 0 : index
    %c0_18 = arith.constant 0 : index
    %43 = vector.load %arg2[%42, %c0_17, %c0_18] : memref<4x128x256xbf16, #tpu.memory_space<vmem>>, vector<1x128x256xbf16>
    %44 = vector.shape_cast %43 : vector<1x128x256xbf16> to vector<128x256xbf16>
    %cst_19 = arith.constant dense<0.000000e+00> : vector<8x256xf32>
    %45 = tpu.matmul %41, %44, %cst_19 {dimension_numbers = #tpu.dot_dimension_numbers<[1], [0], [0], [1], [0, 0, 1, 1], [], []>} : vector<8x128xbf16>, vector<128x256xbf16>, vector<8x256xf32> -> vector<8x256xf32>
    %46 = arith.index_cast %c1_i32 : i32 to index
    %c0_20 = arith.constant 0 : index
    %c0_21 = arith.constant 0 : index
    %47 = vector.load %arg3[%46, %c0_20, %c0_21] : memref<4x1x256xf32, #tpu.memory_space<vmem>>, vector<1x1x256xf32>
    %48 = vector.shape_cast %47 : vector<1x1x256xf32> to vector<1x256xf32>
    %49 = vector.broadcast %48 : vector<1x256xf32> to vector<8x256xf32>
    %50 = arith.addf %45, %49 : vector<8x256xf32>
    %51 = math.tanh %50 : vector<8x256xf32>
    %52 = arith.truncf %51 : vector<8x256xf32> to vector<8x256xbf16>
    %53 = vector.extract_strided_slice %52 {offsets = [0, 0], sizes = [8, 128], strides = [1, 1]} : vector<8x256xbf16> to vector<8x128xbf16>
    %54 = vector.extract_strided_slice %52 {offsets = [0, 128], sizes = [8, 128], strides = [1, 1]} : vector<8x256xbf16> to vector<8x128xbf16>
    %55 = arith.index_cast %c1_i32 : i32 to index
    %c0_22 = arith.constant 0 : index
    %c0_23 = arith.constant 0 : index
    %56 = vector.load %arg4[%55, %c0_22, %c0_23] : memref<4x128x128xbf16, #tpu.memory_space<vmem>>, vector<1x128x128xbf16>
    %57 = vector.shape_cast %56 : vector<1x128x128xbf16> to vector<128x128xbf16>
    %cst_24 = arith.constant dense<0.000000e+00> : vector<8x128xf32>
    %58 = tpu.matmul %53, %57, %cst_24 {dimension_numbers = #tpu.dot_dimension_numbers<[1], [0], [0], [1], [0, 0, 1, 1], [], []>} : vector<8x128xbf16>, vector<128x128xbf16>, vector<8x128xf32> -> vector<8x128xf32>
    %59 = arith.index_cast %c1_i32 : i32 to index
    %c0_25 = arith.constant 0 : index
    %c0_26 = arith.constant 0 : index
    %60 = vector.load %arg5[%59, %c0_25, %c0_26] : memref<4x1x128xf32, #tpu.memory_space<vmem>>, vector<1x1x128xf32>
    %61 = vector.shape_cast %60 : vector<1x1x128xf32> to vector<1x128xf32>
    %62 = vector.broadcast %61 : vector<1x128xf32> to vector<8x128xf32>
    %63 = arith.addf %58, %62 : vector<8x128xf32>
    %64 = math.tanh %63 : vector<8x128xf32>
    %65 = arith.index_cast %c1_i32 : i32 to index
    %c0_27 = arith.constant 0 : index
    %c0_28 = arith.constant 0 : index
    %66 = vector.load %arg6[%65, %c0_27, %c0_28] : memref<4x128x128xbf16, #tpu.memory_space<vmem>>, vector<1x128x128xbf16>
    %67 = vector.shape_cast %66 : vector<1x128x128xbf16> to vector<128x128xbf16>
    %cst_29 = arith.constant dense<0.000000e+00> : vector<8x128xf32>
    %68 = tpu.matmul %54, %67, %cst_29 {dimension_numbers = #tpu.dot_dimension_numbers<[1], [0], [0], [1], [0, 0, 1, 1], [], []>} : vector<8x128xbf16>, vector<128x128xbf16>, vector<8x128xf32> -> vector<8x128xf32>
    %69 = arith.index_cast %c1_i32 : i32 to index
    %c0_30 = arith.constant 0 : index
    %c0_31 = arith.constant 0 : index
    %70 = vector.load %arg7[%69, %c0_30, %c0_31] : memref<4x1x128xf32, #tpu.memory_space<vmem>>, vector<1x1x128xf32>
    %71 = vector.shape_cast %70 : vector<1x1x128xf32> to vector<1x128xf32>
    %72 = vector.broadcast %71 : vector<1x128xf32> to vector<8x128xf32>
    %73 = arith.addf %68, %72 : vector<8x128xf32>
    %74 = math.exp %64 : vector<8x128xf32>
    %75 = arith.mulf %37, %74 : vector<8x128xf32>
    %76 = arith.addf %75, %73 : vector<8x128xf32>
    %cst_32 = arith.constant dense<0.000000e+00> : vector<8xf32>
    %77 = vector.multi_reduction <add>, %64, %cst_32 [1] : vector<8x128xf32> to vector<8xf32>
    %78 = vector.shape_cast %77 : vector<8xf32> to vector<8x1xf32>
    %79 = arith.addf %40, %78 : vector<8x1xf32>
    %c2_i32 = arith.constant 2 : i32
    %80 = arith.truncf %76 : vector<8x128xf32> to vector<8x128xbf16>
    %81 = arith.index_cast %c2_i32 : i32 to index
    %c0_33 = arith.constant 0 : index
    %c0_34 = arith.constant 0 : index
    %82 = vector.load %arg2[%81, %c0_33, %c0_34] : memref<4x128x256xbf16, #tpu.memory_space<vmem>>, vector<1x128x256xbf16>
    %83 = vector.shape_cast %82 : vector<1x128x256xbf16> to vector<128x256xbf16>
    %cst_35 = arith.constant dense<0.000000e+00> : vector<8x256xf32>
    %84 = tpu.matmul %80, %83, %cst_35 {dimension_numbers = #tpu.dot_dimension_numbers<[1], [0], [0], [1], [0, 0, 1, 1], [], []>} : vector<8x128xbf16>, vector<128x256xbf16>, vector<8x256xf32> -> vector<8x256xf32>
    %85 = arith.index_cast %c2_i32 : i32 to index
    %c0_36 = arith.constant 0 : index
    %c0_37 = arith.constant 0 : index
    %86 = vector.load %arg3[%85, %c0_36, %c0_37] : memref<4x1x256xf32, #tpu.memory_space<vmem>>, vector<1x1x256xf32>
    %87 = vector.shape_cast %86 : vector<1x1x256xf32> to vector<1x256xf32>
    %88 = vector.broadcast %87 : vector<1x256xf32> to vector<8x256xf32>
    %89 = arith.addf %84, %88 : vector<8x256xf32>
    %90 = math.tanh %89 : vector<8x256xf32>
    %91 = arith.truncf %90 : vector<8x256xf32> to vector<8x256xbf16>
    %92 = vector.extract_strided_slice %91 {offsets = [0, 0], sizes = [8, 128], strides = [1, 1]} : vector<8x256xbf16> to vector<8x128xbf16>
    %93 = vector.extract_strided_slice %91 {offsets = [0, 128], sizes = [8, 128], strides = [1, 1]} : vector<8x256xbf16> to vector<8x128xbf16>
    %94 = arith.index_cast %c2_i32 : i32 to index
    %c0_38 = arith.constant 0 : index
    %c0_39 = arith.constant 0 : index
    %95 = vector.load %arg4[%94, %c0_38, %c0_39] : memref<4x128x128xbf16, #tpu.memory_space<vmem>>, vector<1x128x128xbf16>
    %96 = vector.shape_cast %95 : vector<1x128x128xbf16> to vector<128x128xbf16>
    %cst_40 = arith.constant dense<0.000000e+00> : vector<8x128xf32>
    %97 = tpu.matmul %92, %96, %cst_40 {dimension_numbers = #tpu.dot_dimension_numbers<[1], [0], [0], [1], [0, 0, 1, 1], [], []>} : vector<8x128xbf16>, vector<128x128xbf16>, vector<8x128xf32> -> vector<8x128xf32>
    %98 = arith.index_cast %c2_i32 : i32 to index
    %c0_41 = arith.constant 0 : index
    %c0_42 = arith.constant 0 : index
    %99 = vector.load %arg5[%98, %c0_41, %c0_42] : memref<4x1x128xf32, #tpu.memory_space<vmem>>, vector<1x1x128xf32>
    %100 = vector.shape_cast %99 : vector<1x1x128xf32> to vector<1x128xf32>
    %101 = vector.broadcast %100 : vector<1x128xf32> to vector<8x128xf32>
    %102 = arith.addf %97, %101 : vector<8x128xf32>
    %103 = math.tanh %102 : vector<8x128xf32>
    %104 = arith.index_cast %c2_i32 : i32 to index
    %c0_43 = arith.constant 0 : index
    %c0_44 = arith.constant 0 : index
    %105 = vector.load %arg6[%104, %c0_43, %c0_44] : memref<4x128x128xbf16, #tpu.memory_space<vmem>>, vector<1x128x128xbf16>
    %106 = vector.shape_cast %105 : vector<1x128x128xbf16> to vector<128x128xbf16>
    %cst_45 = arith.constant dense<0.000000e+00> : vector<8x128xf32>
    %107 = tpu.matmul %93, %106, %cst_45 {dimension_numbers = #tpu.dot_dimension_numbers<[1], [0], [0], [1], [0, 0, 1, 1], [], []>} : vector<8x128xbf16>, vector<128x128xbf16>, vector<8x128xf32> -> vector<8x128xf32>
    %108 = arith.index_cast %c2_i32 : i32 to index
    %c0_46 = arith.constant 0 : index
    %c0_47 = arith.constant 0 : index
    %109 = vector.load %arg7[%108, %c0_46, %c0_47] : memref<4x1x128xf32, #tpu.memory_space<vmem>>, vector<1x1x128xf32>
    %110 = vector.shape_cast %109 : vector<1x1x128xf32> to vector<1x128xf32>
    %111 = vector.broadcast %110 : vector<1x128xf32> to vector<8x128xf32>
    %112 = arith.addf %107, %111 : vector<8x128xf32>
    %113 = math.exp %103 : vector<8x128xf32>
    %114 = arith.mulf %76, %113 : vector<8x128xf32>
    %115 = arith.addf %114, %112 : vector<8x128xf32>
    %cst_48 = arith.constant dense<0.000000e+00> : vector<8xf32>
    %116 = vector.multi_reduction <add>, %103, %cst_48 [1] : vector<8x128xf32> to vector<8xf32>
    %117 = vector.shape_cast %116 : vector<8xf32> to vector<8x1xf32>
    %118 = arith.addf %79, %117 : vector<8x1xf32>
    %c3_i32 = arith.constant 3 : i32
    %119 = arith.truncf %115 : vector<8x128xf32> to vector<8x128xbf16>
    %120 = arith.index_cast %c3_i32 : i32 to index
    %c0_49 = arith.constant 0 : index
    %c0_50 = arith.constant 0 : index
    %121 = vector.load %arg2[%120, %c0_49, %c0_50] : memref<4x128x256xbf16, #tpu.memory_space<vmem>>, vector<1x128x256xbf16>
    %122 = vector.shape_cast %121 : vector<1x128x256xbf16> to vector<128x256xbf16>
    %cst_51 = arith.constant dense<0.000000e+00> : vector<8x256xf32>
    %123 = tpu.matmul %119, %122, %cst_51 {dimension_numbers = #tpu.dot_dimension_numbers<[1], [0], [0], [1], [0, 0, 1, 1], [], []>} : vector<8x128xbf16>, vector<128x256xbf16>, vector<8x256xf32> -> vector<8x256xf32>
    %124 = arith.index_cast %c3_i32 : i32 to index
    %c0_52 = arith.constant 0 : index
    %c0_53 = arith.constant 0 : index
    %125 = vector.load %arg3[%124, %c0_52, %c0_53] : memref<4x1x256xf32, #tpu.memory_space<vmem>>, vector<1x1x256xf32>
    %126 = vector.shape_cast %125 : vector<1x1x256xf32> to vector<1x256xf32>
    %127 = vector.broadcast %126 : vector<1x256xf32> to vector<8x256xf32>
    %128 = arith.addf %123, %127 : vector<8x256xf32>
    %129 = math.tanh %128 : vector<8x256xf32>
    %130 = arith.truncf %129 : vector<8x256xf32> to vector<8x256xbf16>
    %131 = vector.extract_strided_slice %130 {offsets = [0, 0], sizes = [8, 128], strides = [1, 1]} : vector<8x256xbf16> to vector<8x128xbf16>
    %132 = vector.extract_strided_slice %130 {offsets = [0, 128], sizes = [8, 128], strides = [1, 1]} : vector<8x256xbf16> to vector<8x128xbf16>
    %133 = arith.index_cast %c3_i32 : i32 to index
    %c0_54 = arith.constant 0 : index
    %c0_55 = arith.constant 0 : index
    %134 = vector.load %arg4[%133, %c0_54, %c0_55] : memref<4x128x128xbf16, #tpu.memory_space<vmem>>, vector<1x128x128xbf16>
    %135 = vector.shape_cast %134 : vector<1x128x128xbf16> to vector<128x128xbf16>
    %cst_56 = arith.constant dense<0.000000e+00> : vector<8x128xf32>
    %136 = tpu.matmul %131, %135, %cst_56 {dimension_numbers = #tpu.dot_dimension_numbers<[1], [0], [0], [1], [0, 0, 1, 1], [], []>} : vector<8x128xbf16>, vector<128x128xbf16>, vector<8x128xf32> -> vector<8x128xf32>
    %137 = arith.index_cast %c3_i32 : i32 to index
    %c0_57 = arith.constant 0 : index
    %c0_58 = arith.constant 0 : index
    %138 = vector.load %arg5[%137, %c0_57, %c0_58] : memref<4x1x128xf32, #tpu.memory_space<vmem>>, vector<1x1x128xf32>
    %139 = vector.shape_cast %138 : vector<1x1x128xf32> to vector<1x128xf32>
    %140 = vector.broadcast %139 : vector<1x128xf32> to vector<8x128xf32>
    %141 = arith.addf %136, %140 : vector<8x128xf32>
    %142 = math.tanh %141 : vector<8x128xf32>
    %143 = arith.index_cast %c3_i32 : i32 to index
    %c0_59 = arith.constant 0 : index
    %c0_60 = arith.constant 0 : index
    %144 = vector.load %arg6[%143, %c0_59, %c0_60] : memref<4x128x128xbf16, #tpu.memory_space<vmem>>, vector<1x128x128xbf16>
    %145 = vector.shape_cast %144 : vector<1x128x128xbf16> to vector<128x128xbf16>
    %cst_61 = arith.constant dense<0.000000e+00> : vector<8x128xf32>
    %146 = tpu.matmul %132, %145, %cst_61 {dimension_numbers = #tpu.dot_dimension_numbers<[1], [0], [0], [1], [0, 0, 1, 1], [], []>} : vector<8x128xbf16>, vector<128x128xbf16>, vector<8x128xf32> -> vector<8x128xf32>
    %147 = arith.index_cast %c3_i32 : i32 to index
    %c0_62 = arith.constant 0 : index
    %c0_63 = arith.constant 0 : index
    %148 = vector.load %arg7[%147, %c0_62, %c0_63] : memref<4x1x128xf32, #tpu.memory_space<vmem>>, vector<1x1x128xf32>
    %149 = vector.shape_cast %148 : vector<1x1x128xf32> to vector<1x128xf32>
    %150 = vector.broadcast %149 : vector<1x128xf32> to vector<8x128xf32>
    %151 = arith.addf %146, %150 : vector<8x128xf32>
    %152 = math.exp %142 : vector<8x128xf32>
    %153 = arith.mulf %115, %152 : vector<8x128xf32>
    %154 = arith.addf %153, %151 : vector<8x128xf32>
    %cst_64 = arith.constant dense<0.000000e+00> : vector<8xf32>
    %155 = vector.multi_reduction <add>, %142, %cst_64 [1] : vector<8x128xf32> to vector<8xf32>
    %156 = vector.shape_cast %155 : vector<8xf32> to vector<8x1xf32>
    %157 = arith.addf %118, %156 : vector<8x1xf32>
    %c4_i32 = arith.constant 4 : i32
    %c0_65 = arith.constant 0 : index
    %c0_66 = arith.constant 0 : index
    %158 = vector.load %arg8[%c0_65, %c0_66] : memref<8x128xf32, #tpu.memory_space<vmem>>, vector<8x128xf32>
    tpu.vector_store %arg8[%c0_65, %c0_66], %154 {strides = array<i32>} : memref<8x128xf32, #tpu.memory_space<vmem>>, vector<8x128xf32>,
    %159 = vector.shape_cast %157 : vector<8x1xf32> to vector<8x1xf32>
    %160 = vector.broadcast %159 : vector<8x1xf32> to vector<8x8xf32>
    %c0_67 = arith.constant 0 : index
    %c0_68 = arith.constant 0 : index
    %161 = vector.load %arg9[%c0_67, %c0_68] : memref<8x8xf32, #tpu.memory_space<vmem>>, vector<8x8xf32>
    tpu.vector_store %arg9[%c0_67, %c0_68], %160 {strides = array<i32>} : memref<8x8xf32, #tpu.memory_space<vmem>>, vector<8x8xf32>,
    return
  }
  func.func @transform_0(%arg0: i32) -> (i32, i32) {
    %c0_i32 = arith.constant 0 : i32
    %c0_i32_0 = arith.constant 0 : i32
    return %arg0, %c0_i32 : i32, i32
  }
  func.func @transform_1(%arg0: i32) -> (i32, i32, i32) {
    %c0_i32 = arith.constant 0 : i32
    %c0_i32_0 = arith.constant 0 : i32
    %c0_i32_1 = arith.constant 0 : i32
    %c0_i32_2 = arith.constant 0 : i32
    return %c0_i32, %c0_i32_0, %c0_i32_1 : i32, i32, i32
  }
  func.func @transform_2(%arg0: i32) -> (i32, i32, i32) {
    %c0_i32 = arith.constant 0 : i32
    %c0_i32_0 = arith.constant 0 : i32
    %c0_i32_1 = arith.constant 0 : i32
    %c0_i32_2 = arith.constant 0 : i32
    return %c0_i32, %c0_i32_0, %c0_i32_1 : i32, i32, i32
  }
  func.func @transform_3(%arg0: i32) -> (i32, i32, i32) {
    %c0_i32 = arith.constant 0 : i32
    %c0_i32_0 = arith.constant 0 : i32
    %c0_i32_1 = arith.constant 0 : i32
    %c0_i32_2 = arith.constant 0 : i32
    return %c0_i32, %c0_i32_0, %c0_i32_1 : i32, i32, i32
  }
  func.func @transform_4(%arg0: i32) -> (i32, i32, i32) {
    %c0_i32 = arith.constant 0 : i32
    %c0_i32_0 = arith.constant 0 : i32
    %c0_i32_1 = arith.constant 0 : i32
    %c0_i32_2 = arith.constant 0 : i32
    return %c0_i32, %c0_i32_0, %c0_i32_1 : i32, i32, i32
  }
  func.func @transform_5(%arg0: i32) -> (i32, i32, i32) {
    %c0_i32 = arith.constant 0 : i32
    %c0_i32_0 = arith.constant 0 : i32
    %c0_i32_1 = arith.constant 0 : i32
    %c0_i32_2 = arith.constant 0 : i32
    return %c0_i32, %c0_i32_0, %c0_i32_1 : i32, i32, i32
  }
  func.func @transform_6(%arg0: i32) -> (i32, i32, i32) {
    %c0_i32 = arith.constant 0 : i32
    %c0_i32_0 = arith.constant 0 : i32
    %c0_i32_1 = arith.constant 0 : i32
    %c0_i32_2 = arith.constant 0 : i32
    return %c0_i32, %c0_i32_0, %c0_i32_1 : i32, i32, i32
  }
  func.func @transform_7(%arg0: i32) -> (i32, i32) {
    %c0_i32 = arith.constant 0 : i32
    %c0_i32_0 = arith.constant 0 : i32
    return %arg0, %c0_i32 : i32, i32
  }
  func.func @transform_8(%arg0: i32) -> (i32, i32) {
    %c0_i32 = arith.constant 0 : i32
    %c0_i32_0 = arith.constant 0 : i32
    return %arg0, %c0_i32 : i32, i32
  }
}

</mosaic_0001>

<bundles_post_ra>
// kernel: flow_forward.1
= control target key start
LH: loop header
LB: loop body
LE: loop exit
PB: predicated region body
PF: predicated region fallthrough
CT: control target
= control target key end

     0   :  { %14 = vsyncpa [#allocation3], 0  ;;  %s2591_s0 = inlined_call_operand.vmem [shape: f32[8,128], index: 0, kind: input, shape index: {}]   ;;  %s2592_s1 = inlined_call_operand.hbm [shape: bf16[4,128,256], index: 1, kind: input, shape index: {}]   ;;  %s2593_s2 = inlined_call_operand.vmem [shape: f32[4,1,256], index: 2, kind: input, shape index: {}]   ;;  %s2594_s3 = inlined_call_operand.hbm [shape: bf16[4,128,128], index: 3, kind: input, shape index: {}]   ;;  %s2595_s4 = inlined_call_operand.vmem [shape: f32[4,1,128], index: 4, kind: input, shape index: {}]   ;;  %s2596_s5 = inlined_call_operand.hbm [shape: bf16[4,128,128], index: 5, kind: input, shape index: {}]   ;;  %s2597_s6 = inlined_call_operand.vmem [shape: f32[4,1,128], index: 6, kind: input, shape index: {}]   ;;  %s2598_s7 = inlined_call_operand.hbm [shape: f32[8,128], index: 7, kind: output, shape index: {0}]   ;;  %s2599_s8 = inlined_call_operand.vmem [shape: f32[8,8], index: 8, kind: output, shape index: {1}]  }
   0x1   :  { %15 = vsyncpa [#allocation6], 0 }
   0x2   :  { %16 = vsyncpa [#allocation4], 0  ;;  %s2323_s27 = smov [#allocation5]   ;;  %s2229_s9 = scalar_lea.hbm %s2594_s3, 4096 }
   0x3   :  { %s38_s28 = sshll.u32 %s2323_s27, 4  ;;  %p2230_p0 = scmp.ne.s32.totalorder %s2594_s3, %s2229_s9  ;;  %s39_s28 = int_to_ptr.vmem [resolvable:$true] %s38_s28 }
   0x4   :  { %p2233_p1 = scmp.lt.u32.totalorder %s2229_s9, %s2594_s3 }
   0x6   :  { %p2235_p2 = pnand %p2233_p1, %p2230_p0 }
   0x8   :  { %2238 = shalt.err (!%p2235_p2)
}
   0x9   :  { %s2239_s14 = scalar_lea.vmem %s39_s28, 4096  ;;  %p2244_p4 = scmp.lt.s32.totalorder %s39_s28, %s39_s28 }
   0xa   :  { %p2240_p3 = scmp.ne.s32.totalorder %s39_s28, %s2239_s14  ;;  %p2245_p5 = scmp.lt.s32.totalorder %s2239_s14, %s2239_s14 }
   0xc   :  { %p2246_p6 = por %p2245_p5, %p2244_p4 }
   0xe   :  { %p2247_p7 = pnand %p2246_p6, %p2240_p3 }
  0x10   :  { %2250 = shalt.err (!%p2247_p7)
}
  0x11   :  { %s2324_s15 = smov 64   ;;  %s2325_s16 = smov 4  }
  0x12   :  { %44 = dma.hbm_to_vmem [thread:$0]  %s2594_s3, 4096, %s39_s28, [#allocation6], %s2324_s15, %s2324_s15, %s2325_s16  }
  0x13   :  { %s2326_s19 = smov [#allocation2]   ;;  %s2251_s23 = scalar_lea.hbm %s2592_s1, 8192 }
  0x14   :  { %s24_s20 = sshll.u32 %s2326_s19, 4  ;;  %p2252_p8 = scmp.ne.s32.totalorder %s2592_s1, %s2251_s23  ;;  %s25_s20 = int_to_ptr.vmem [resolvable:$true] %s24_s20 }
  0x15   :  { %p2255_p9 = scmp.lt.u32.totalorder %s2251_s23, %s2592_s1 }
  0x17   :  { %p2257_p10 = pnand %p2255_p9, %p2252_p8 }
  0x19   :  { %2260 = shalt.err (!%p2257_p10)
}
  0x1a   :  { %s2261_s29 = scalar_lea.vmem %s25_s20, 8192  ;;  %p2266_p12 = scmp.lt.s32.totalorder %s25_s20, %s25_s20 }
  0x1b   :  { %p2262_p11 = scmp.ne.s32.totalorder %s25_s20, %s2261_s29  ;;  %p2267_p13 = scmp.lt.s32.totalorder %s2261_s29, %s2261_s29 }
  0x1d   :  { %p2268_p0 = por %p2267_p13, %p2266_p12 }
  0x1f   :  { %p2269_p1 = pnand %p2268_p0, %p2262_p11 }
  0x21   :  { %2272 = shalt.err (!%p2269_p1)
}
  0x22   :  { %s2327_s3 = smov 128   ;;  %s2328_s28 = smov 8  }
  0x23   :  { %30 = dma.hbm_to_vmem [thread:$0]  %s2592_s1, 8192, %s25_s20, [#allocation3], %s2327_s3, %s2327_s3, %s2328_s28  }
  0x24   :  { %s2329_s10 = smov [#allocation7]   ;;  %s2273_s14 = scalar_lea.hbm %s2596_s5, 4096 }
  0x25   :  { %s52_s11 = sshll.u32 %s2329_s10, 4  ;;  %p2274_p2 = scmp.ne.s32.totalorder %s2596_s5, %s2273_s14  ;;  %s53_s11 = int_to_ptr.vmem [resolvable:$true] %s52_s11 }
  0x26   :  { %p2277_p3 = scmp.lt.u32.totalorder %s2273_s14, %s2596_s5 }
  0x28   :  { %p2279_p4 = pnand %p2277_p3, %p2274_p2 }
  0x2a   :  { %2282 = shalt.err (!%p2279_p4)
}
  0x2b   :  { %s2283_s22 = scalar_lea.vmem %s53_s11, 4096  ;;  %p2288_p6 = scmp.lt.s32.totalorder %s53_s11, %s53_s11 }
  0x2c   :  { %p2284_p5 = scmp.ne.s32.totalorder %s53_s11, %s2283_s22  ;;  %p2289_p7 = scmp.lt.s32.totalorder %s2283_s22, %s2283_s22 }
  0x2e   :  { %p2290_p8 = por %p2289_p7, %p2288_p6 }
  0x30   :  { %p2291_p9 = pnand %p2290_p8, %p2284_p5 }
  0x32   :  { %2294 = shalt.err (!%p2291_p9)
}
  0x33   :  { %58 = dma.hbm_to_vmem [thread:$0]  %s2596_s5, 4096, %s53_s11, [#allocation6], %s2324_s15, %s2324_s15, %s2325_s16  }
  0x34   :  { %2317 = dma.done.wait [#allocation3], 8192  }
  0x35   :  { %2318 = vsyncadd [#allocation3], 4294959104 }
  0x36   :  { %2319 = dma.done.wait [#allocation6], 8192  }
  0x37   :  { %2320 = vsyncadd [#allocation6], 4294959104  ;;  %v2330_v0 = vmov 0   ;;  %v2331_v1 = vmov 0.0   ;;  %v2037_v2 = vld [vmem:[#allocation2 + $0x4] ss:$8 sps:$4 sm:$0xff]   ;;  %v91_v36 = vlaneseq }
  0x38   :  { %213 = vmatprep.mubr.bf16.mxu0 %v2330_v0  ;;  %1866 = vmatprep.subr.bf16.mxu1 %v2331_v1  ;;  %v2039_v3 = vld [vmem:[#allocation2] ss:$8 sps:$4 sm:$0xff]   ;;  %v2040_v4 = vld [vmem:[#allocation2 + $0x14] ss:$8 sps:$4 sm:$0xff]   ;;  %v2042_v5 = vld [vmem:[#allocation2 + $0x10] ss:$8 sps:$4 sm:$0xff]  }
  0x39   :  { %181 = vmatprep.subr.bf16.mxu0 %v2037_v2  ;;  %v2043_v6 = vld [vmem:[#allocation2 + $0x24] ss:$8 sps:$4 sm:$0xff]   ;;  %v2045_v7 = vld [vmem:[#allocation2 + $0x20] ss:$8 sps:$4 sm:$0xff]   ;;  %v2046_v8 = vld [vmem:[#allocation2 + $0x34] ss:$8 sps:$4 sm:$0xff]  }
  0x3a   :  { %182 = vmatpush1.bf16.msra.mxu0 %v2039_v3  ;;  %v2048_v9 = vld [vmem:[#allocation2 + $0x30] ss:$8 sps:$4 sm:$0xff]   ;;  %v2061_v10 = vld [vmem:[#allocation5] sm:$0xff]   ;;  %v2063_v12 = vld [vmem:[#allocation5 + $0x8] sm:$0xff]   ;;  %vm2332_vm0 = vmmov 0   ;;  %v92_v37 = vshrl.u32 %v91_v36, 7 }
  0x3b   :  { %183 = vmatprep.subr.bf16.mxu0 %v2040_v4  ;;  %v2049_v11 = vld [vmem:[#allocation2 + $0x44] ss:$8 sps:$4 sm:$0xff]   ;;  %1867 = vmatpush3.bf16.msra.mxu1 %v2061_v10  ;;  %v2051_v13 = vld [vmem:[#allocation2 + $0x40] ss:$8 sps:$4 sm:$0xff]   ;;  %v2052_v14 = vld [vmem:[#allocation2 + $0x54] ss:$8 sps:$4 sm:$0xff]  }
  0x3c   :  { %1868 = vmatprep.subr.bf16.mxu1 %v2331_v1  ;;  %v2054_v15 = vld [vmem:[#allocation2 + $0x50] ss:$8 sps:$4 sm:$0xff]   ;;  %v2055_v17 = vld [vmem:[#allocation2 + $0x64] ss:$8 sps:$4 sm:$0xff]   ;;  %v2057_v19 = vld [vmem:[#allocation2 + $0x60] ss:$8 sps:$4 sm:$0xff]   ;;  %1882 = vmatprep.mubr.msk.bf16.mxu1 %vm2332_vm0, %v2331_v1 }
  0x3d   :  { %v2065_v16 = vld [vmem:[#allocation5 + $0x10] sm:$0xff]   ;;  %v2067_v18 = vld [vmem:[#allocation5 + $0x18] sm:$0xff]   ;;  %v2429_v22 = vld [vmem:[%s2591_s0] sm:$0xff]  ;;  %v2450_v38 = vsub.s32 0, %v92_v37  ;;  %v2455_v40 = vsub.s32 1, %v92_v37 }
  0x3e   :  { %184 = vmatpush1.bf16.msra.mxu0 %v2042_v5  ;;  %v2058_v20 = vld [vmem:[#allocation2 + $0x74] ss:$8 sps:$4 sm:$0xff]   ;;  %v2060_v21 = vld [vmem:[#allocation2 + $0x70] ss:$8 sps:$4 sm:$0xff]   ;;  %v2062_v23 = vld [vmem:[#allocation7] sm:$0xff]   ;;  %v72_v24 = vpack.c.bf16 %v2429_v22, %v2429_v22 }
  0x3f   :  { %185 = vmatprep.subr.bf16.mxu0 %v2043_v6  ;;  %1869 = vmatpush3.bf16.msra.mxu1 %v2063_v12  ;;  %v2064_v25 = vld [vmem:[#allocation7 + $0x8] sm:$0xff]   ;;  %v2066_v26 = vld [vmem:[#allocation7 + $0x10] sm:$0xff]   ;;  %v2068_v27 = vld [vmem:[#allocation7 + $0x18] sm:$0xff]  }
  0x40   :  { %1870 = vmatprep.subr.bf16.mxu1 %v2331_v1  ;;  %v2069_v28 = vld [vmem:[#allocation5 + $0x20] sm:$0xff]   ;;  %v2071_v30 = vld [vmem:[#allocation5 + $0x28] sm:$0xff]   ;;  %v2073_v32 = vld [vmem:[#allocation5 + $0x30] sm:$0xff]  }
  0x41   :  { %v2070_v29 = vld [vmem:[#allocation7 + $0x20] sm:$0xff]   ;;  %v2072_v31 = vld [vmem:[#allocation7 + $0x28] sm:$0xff]   ;;  %v2074_v33 = vld [vmem:[#allocation7 + $0x30] sm:$0xff]  }
  0x42   :  { %186 = vmatpush1.bf16.msra.mxu0 %v2045_v7  ;;  %v2075_v34 = vld [vmem:[#allocation5 + $0x38] sm:$0xff]   ;;  %v89_v39 = vld [vmem:[%s2593_s2] sm:$0x3]  ;;  %v2079_v53 = vld [vmem:[#allocation2 + $0x84] ss:$8 sps:$4 sm:$0xff]  }
  0x43   :  { %187 = vmatprep.subr.bf16.mxu0 %v2046_v8  ;;  %1871 = vmatpush3.bf16.msra.mxu1 %v2065_v16  ;;  %v2076_v35 = vld [vmem:[#allocation7 + $0x38] sm:$0xff]   ;;  %v94_v41 = vrot.slane %v89_v39, %v2450_v38  ;;  %v98_v42 = vrot.slane %v89_v39, %v2455_v40  ;;  %v2077_v54 = vld [vmem:[#allocation2 + $0x80] ss:$8 sps:$4 sm:$0xff]   ;;  %v2085_v57 = vld [vmem:[#allocation2 + $0xa4] ss:$8 sps:$4 sm:$0xff]  }
  0x44   :  { %1872 = vmatprep.subr.bf16.mxu1 %v2331_v1  ;;  %v2082_v55 = vld [vmem:[#allocation2 + $0x94] ss:$8 sps:$4 sm:$0xff]   ;;  %v2080_v56 = vld [vmem:[#allocation2 + $0x90] ss:$8 sps:$4 sm:$0xff]   ;;  %v2083_v58 = vld [vmem:[#allocation2 + $0xa0] ss:$8 sps:$4 sm:$0xff]  }
  0x45   :  { %v2088_v59 = vld [vmem:[#allocation2 + $0xb4] ss:$8 sps:$4 sm:$0xff]   ;;  %v2086_v60 = vld [vmem:[#allocation2 + $0xb0] ss:$8 sps:$4 sm:$0xff]   ;;  %v2091_v61 = vld [vmem:[#allocation2 + $0xc4] ss:$8 sps:$4 sm:$0xff]  }
  0x46   :  { %188 = vmatpush1.bf16.msra.mxu0 %v2048_v9  ;;  %v2089_v62 = vld [vmem:[#allocation2 + $0xc0] ss:$8 sps:$4 sm:$0xff]   ;;  %v2094_v63 = vld [vmem:[#allocation2 + $0xd4] ss:$8 sps:$4 sm:$0xff]   ;;  %v2092_v2 = vld [vmem:[#allocation2 + $0xd0] ss:$8 sps:$4 sm:$0xff]  }
  0x47   :  { %189 = vmatprep.subr.bf16.mxu0 %v2049_v11  ;;  %1873 = vmatpush3.bf16.msra.mxu1 %v2067_v18  ;;  %v2097_v3 = vld [vmem:[#allocation2 + $0xe4] ss:$8 sps:$4 sm:$0xff]   ;;  %v2095_v4 = vld [vmem:[#allocation2 + $0xe0] ss:$8 sps:$4 sm:$0xff]   ;;  %v2100_v5 = vld [vmem:[#allocation2 + $0xf4] ss:$8 sps:$4 sm:$0xff]  }
  0x48   :  { %1874 = vmatprep.subr.bf16.mxu1 %v2331_v1  ;;  %v2098_v6 = vld [vmem:[#allocation2 + $0xf0] ss:$8 sps:$4 sm:$0xff]   ;;  %v1665_v7 = vld [vmem:[%s2595_s4] ss:$0 sm:$0xff]  ;;  %v2112_v36 = vld [vmem:[#allocation7 + $0x68] sm:$0xff]  }
  0x49   :  { %v2113_v37 = vld [vmem:[#allocation5 + $0x70] sm:$0xff]  }
  0x4a   :  { %190 = vmatpush1.bf16.msra.mxu0 %v2051_v13  ;;  %v2114_v39 = vld [vmem:[#allocation7 + $0x70] sm:$0xff]  }
  0x4b   :  { %191 = vmatprep.subr.bf16.mxu0 %v2052_v14  ;;  %1875 = vmatpush3.bf16.msra.mxu1 %v2069_v28 }
  0x4c   :  { %1876 = vmatprep.subr.bf16.mxu1 %v2331_v1 }
  0x4e   :  { %192 = vmatpush1.bf16.msra.mxu0 %v2054_v15 }
  0x4f   :  { %193 = vmatprep.subr.bf16.mxu0 %v2055_v17  ;;  %1877 = vmatpush3.bf16.msra.mxu1 %v2071_v30  ;;  %v2104_v30 = vld [vmem:[#allocation7 + $0x48] sm:$0xff]  }
  0x50   :  { %1878 = vmatprep.subr.bf16.mxu1 %v2331_v1 }
  0x52   :  { %194 = vmatpush1.bf16.msra.mxu0 %v2057_v19  ;;  %v1674_v19 = vld [vmem:[%s2597_s6] ss:$0 sm:$0xff] }
  0x53   :  { %195 = vmatprep.subr.bf16.mxu0 %v2058_v20  ;;  %1879 = vmatpush3.bf16.msra.mxu1 %v2073_v32  ;;  %v2108_v32 = vld [vmem:[#allocation7 + $0x58] sm:$0xff]  }
  0x54   :  { %1880 = vmatprep.subr.bf16.mxu1 %v2331_v1 }
  0x56   :  { %196 = vmatpush1.bf16.msra.mxu0 %v2060_v21 }
  0x57   :  { %1886 = vmatprep.subr.bf16.mxu0 %v2331_v1  ;;  %1881 = vmatpush3.bf16.msra.mxu1 %v2075_v34  ;;  %v2110_v34 = vld [vmem:[#allocation7 + $0x60] sm:$0xff]  }
  0x58   :  { %567 = vmatprep.subr.bf16.mxu1 %v2079_v53 }
  0x59   :  { %214 = vmatmul.mubr.bf16.vlgmr.msra.gmra.mrb[0].mxu0 %v72_v24  ;;  %v2101_v24 = vld [vmem:[#allocation5 + $0x40] sm:$0xff]  }
  0x5a   :  { %1887 = vmatpush3.bf16.msra.mxu0 %v2062_v23  ;;  %1902 = vmatprep.mubr.msk.bf16.mxu0 %vm2332_vm0, %v2331_v1 }
  0x5b   :  { %1888 = vmatprep.subr.bf16.mxu0 %v2331_v1 }
  0x5e   :  { %1889 = vmatpush3.bf16.msra.mxu0 %v2064_v25 }
  0x5f   :  { %1890 = vmatprep.subr.bf16.mxu0 %v2331_v1 }
  0x62   :  { %1891 = vmatpush3.bf16.msra.mxu0 %v2066_v26  ;;  %v2103_v26 = vld [vmem:[#allocation5 + $0x48] sm:$0xff]  }
  0x63   :  { %1892 = vmatprep.subr.bf16.mxu0 %v2331_v1 }
  0x66   :  { %1893 = vmatpush3.bf16.msra.mxu0 %v2068_v27  ;;  %v2102_v27 = vld [vmem:[#allocation7 + $0x40] sm:$0xff]  }
  0x67   :  { %1894 = vmatprep.subr.bf16.mxu0 %v2331_v1 }
  0x6a   :  { %1895 = vmatpush3.bf16.msra.mxu0 %v2070_v29  ;;  %v2105_v29 = vld [vmem:[#allocation5 + $0x50] sm:$0xff]  }
  0x6b   :  { %1896 = vmatprep.subr.bf16.mxu0 %v2331_v1 }
  0x6e   :  { %1897 = vmatpush3.bf16.msra.mxu0 %v2072_v31  ;;  %v2106_v31 = vld [vmem:[#allocation7 + $0x50] sm:$0xff]  }
  0x6f   :  { %1898 = vmatprep.subr.bf16.mxu0 %v2331_v1 }
  0x72   :  { %1899 = vmatpush3.bf16.msra.mxu0 %v2074_v33  ;;  %v2109_v33 = vld [vmem:[#allocation5 + $0x60] sm:$0xff]  }
  0x73   :  { %1900 = vmatprep.subr.bf16.mxu0 %v2331_v1 }
  0x76   :  { %1901 = vmatpush3.bf16.msra.mxu0 %v2076_v35  ;;  %v2111_v35 = vld [vmem:[#allocation5 + $0x68] sm:$0xff]  }
  0x77   :  { %1906 = vmatprep.subr.bf16.mxu0 %v2331_v1 }
 0x12c   :  { %v215_v43 = vpop.f32.mrb[0].mxu0 }
 0x12d   :  { %v216_v44 = vadd.f32 %v215_v43, %v94_v41  ;;  %v217_v45 = vpop.f32.mrb[1].mxu0  ;;  %v2115_v41 = vld [vmem:[#allocation5 + $0x78] sm:$0xff]   ;;  %v1683_v43 = vld [vmem:[%s2593_s2 + $0x2] sm:$0x3] }
 0x12e   :  { %v218_v46 = vadd.f32 %v217_v45, %v98_v42  ;;  %v219_v47 = vpop.f32.mrb[2].mxu0  ;;  %v2116_v42 = vld [vmem:[#allocation7 + $0x78] sm:$0xff]   ;;  %v484_v45 = vrot.slane %v1683_v43, %v2455_v40 }
 0x12f   :  { %2197 = vtanh.f32 %v216_v44  ;;  %v220_v48 = vpop.f32.mrb[3].mxu0  ;;  %v480_v44 = vrot.slane %v1683_v43, %v2450_v38  ;;  %v2154_v43 = vld [vmem:[#allocation7 + $0xb0] sm:$0xff]  }
 0x130   :  { %2199 = vtanh.f32 %v218_v46 }
 0x139   :  { %v2198_v49 = vpop.eup %2197 }
 0x13a   :  { %v2200_v50 = vpop.eup %2199  ;;  %v224_v51 = vpack.c.bf16 %v2198_v49, %v2198_v49 }
 0x13b   :  { %v225_v52 = vpack.c.bf16 %v2200_v50, %v2200_v50 }
 0x13c   :  { %1883 = vmatmul.mubr.bf16.vlgmr.msra.gmra.mrb[0].mxu1 %v224_v51 }
 0x13d   :  { %1903 = vmatmul.mubr.bf16.vlgmr.msra.gmra.mrb[4].mxu0 %v225_v52  ;;  %599 = vmatprep.mubr.bf16.mxu1 %v2330_v0 }
 0x13e   :  { %1922 = vmatprep.mubr.msk.bf16.mxu0 %vm2332_vm0, %v2331_v1  ;;  %568 = vmatpush1.bf16.msra.mxu1 %v2077_v54 }
 0x13f   :  { %569 = vmatprep.subr.bf16.mxu1 %v2082_v55  ;;  %1907 = vmatpush3.bf16.msra.mxu0 %v2101_v24 }
 0x140   :  { %1908 = vmatprep.subr.bf16.mxu0 %v2331_v1 }
 0x142   :  { %570 = vmatpush1.bf16.msra.mxu1 %v2080_v56  ;;  %v2119_v56 = vld [vmem:[#allocation2 + $0x104] ss:$8 sps:$4 sm:$0xff]  }
 0x143   :  { %571 = vmatprep.subr.bf16.mxu1 %v2085_v57  ;;  %1909 = vmatpush3.bf16.msra.mxu0 %v2103_v26  ;;  %v2117_v57 = vld [vmem:[#allocation2 + $0x100] ss:$8 sps:$4 sm:$0xff]  }
 0x144   :  { %1910 = vmatprep.subr.bf16.mxu0 %v2331_v1 }
 0x146   :  { %572 = vmatpush1.bf16.msra.mxu1 %v2083_v58  ;;  %v2122_v58 = vld [vmem:[#allocation2 + $0x114] ss:$8 sps:$4 sm:$0xff]  }
 0x147   :  { %573 = vmatprep.subr.bf16.mxu1 %v2088_v59  ;;  %1911 = vmatpush3.bf16.msra.mxu0 %v2105_v29  ;;  %v2120_v59 = vld [vmem:[#allocation2 + $0x110] ss:$8 sps:$4 sm:$0xff]  }
 0x148   :  { %1912 = vmatprep.subr.bf16.mxu0 %v2331_v1 }
 0x14a   :  { %574 = vmatpush1.bf16.msra.mxu1 %v2086_v60  ;;  %v2125_v60 = vld [vmem:[#allocation2 + $0x124] ss:$8 sps:$4 sm:$0xff]  }
 0x14b   :  { %575 = vmatprep.subr.bf16.mxu1 %v2091_v61  ;;  %v2123_v61 = vld [vmem:[#allocation2 + $0x120] ss:$8 sps:$4 sm:$0xff]  }
 0x14e   :  { %576 = vmatpush1.bf16.msra.mxu1 %v2089_v62  ;;  %v2128_v62 = vld [vmem:[#allocation2 + $0x134] ss:$8 sps:$4 sm:$0xff]  }
 0x14f   :  { %577 = vmatprep.subr.bf16.mxu1 %v2094_v63  ;;  %v2126_v63 = vld [vmem:[#allocation2 + $0x130] ss:$8 sps:$4 sm:$0xff]  }
 0x152   :  { %578 = vmatpush1.bf16.msra.mxu1 %v2092_v2  ;;  %v2131_v2 = vld [vmem:[#allocation2 + $0x144] ss:$8 sps:$4 sm:$0xff]  }
 0x153   :  { %579 = vmatprep.subr.bf16.mxu1 %v2097_v3  ;;  %v2129_v3 = vld [vmem:[#allocation2 + $0x140] ss:$8 sps:$4 sm:$0xff]  }
 0x156   :  { %580 = vmatpush1.bf16.msra.mxu1 %v2095_v4  ;;  %v2134_v4 = vld [vmem:[#allocation2 + $0x154] ss:$8 sps:$4 sm:$0xff]  }
 0x157   :  { %581 = vmatprep.subr.bf16.mxu1 %v2100_v5  ;;  %v2132_v5 = vld [vmem:[#allocation2 + $0x150] ss:$8 sps:$4 sm:$0xff]  }
 0x15a   :  { %582 = vmatpush1.bf16.msra.mxu1 %v2098_v6  ;;  %v2137_v6 = vld [vmem:[#allocation2 + $0x164] ss:$8 sps:$4 sm:$0xff]  }
 0x15b   :  { %1926 = vmatprep.subr.bf16.mxu1 %v2331_v1 }
 0x20f   :  { %v331_v8 = vpop.f32.mrb[0].mxu1 }
 0x210   :  { %v332_v9 = vadd.f32 %v1665_v7, %v331_v8  ;;  %v1884_v10 = vpop.f32.mrb[1].mxu1  ;;  %v443_v11 = vpop.f32.mrb[4].mxu0  ;;  %v2135_v7 = vld [vmem:[#allocation2 + $0x160] ss:$8 sps:$4 sm:$0xff]   ;;  %v2140_v8 = vld [vmem:[#allocation2 + $0x174] ss:$8 sps:$4 sm:$0xff]  }
 0x211   :  { %v334_v12 = vpop.f32.mrb[2].mxu1  ;;  %v1904_v13 = vpop.f32.mrb[5].mxu0  ;;  %v444_v21 = vadd.f32 %v1674_v19, %v443_v11  ;;  %v1701_v10 = vld [vmem:[%s2595_s4 + $0x1] ss:$0 sm:$0xff] }
 0x212   :  { %2201 = vtanh.f32 %v332_v9  ;;  %v1885_v14 = vpop.f32.mrb[3].mxu1  ;;  %v446_v15 = vpop.f32.mrb[6].mxu0  ;;  %v2138_v9 = vld [vmem:[#allocation2 + $0x170] ss:$8 sps:$4 sm:$0xff]  }
 0x213   :  { %v1905_v16 = vpop.f32.mrb[7].mxu0 }
 0x21c   :  { %v2202_v17 = vpop.eup %2201 }
 0x21d   :  { %v449_v18 = vmul.f32 1.442695, %v2202_v17  ;;  %453 = vadd.xlane.f32.xlu0 %v2202_v17 }
 0x21f   :  { %2203 = vpow2.f32 %v449_v18 }
 0x229   :  { %v2204_v20 = vpop.eup %2203 }
 0x22a   :  { %v451_v23 = vmul.f32 %v2204_v20, %v2429_v22  ;;  %v2107_v22 = vld [vmem:[#allocation5 + $0x58] sm:$0xff]  }
 0x22b   :  { %1913 = vmatpush3.bf16.msra.mxu0 %v2107_v22  ;;  %v2143_v22 = vld [vmem:[#allocation5 + $0x88] sm:$0xff]  }
 0x22c   :  { %v2470_v25 = vadd.f32 %v451_v23, %v444_v21  ;;  %1914 = vmatprep.subr.bf16.mxu0 %v2331_v1  ;;  %v1711_v23 = vld [vmem:[%s2597_s6 + $0x1] ss:$0 sm:$0xff] }
 0x22e   :  { %v456_v28 = vpack.c.bf16 %v2470_v25, %v2470_v25 }
 0x22f   :  { %1915 = vmatpush3.bf16.msra.mxu0 %v2109_v33  ;;  %v2145_v33 = vld [vmem:[#allocation5 + $0x90] sm:$0xff]  }
 0x230   :  { %600 = vmatmul.mubr.bf16.vlgmr.msra.gmra.mrb[4].mxu1 %v456_v28  ;;  %1916 = vmatprep.subr.bf16.mxu0 %v2331_v1  ;;  %v2141_v28 = vld [vmem:[#allocation5 + $0x80] sm:$0xff]  }
 0x231   :  { %1927 = vmatpush3.bf16.msra.mxu1 %v2102_v27  ;;  %1942 = vmatprep.mubr.msk.bf16.mxu1 %vm2332_vm0, %v2331_v1 }
 0x232   :  { %1928 = vmatprep.subr.bf16.mxu1 %v2331_v1 }
 0x233   :  { %1917 = vmatpush3.bf16.msra.mxu0 %v2111_v35  ;;  %v2148_v35 = vld [vmem:[#allocation7 + $0x98] sm:$0xff]  }
 0x234   :  { %1918 = vmatprep.subr.bf16.mxu0 %v2331_v1 }
 0x235   :  { %1929 = vmatpush3.bf16.msra.mxu1 %v2104_v30  ;;  %v2142_v30 = vld [vmem:[#allocation7 + $0x80] sm:$0xff]  }
 0x236   :  { %1930 = vmatprep.subr.bf16.mxu1 %v2331_v1 }
 0x237   :  { %1919 = vmatpush3.bf16.msra.mxu0 %v2113_v37  ;;  %v2150_v37 = vld [vmem:[#allocation7 + $0xa0] sm:$0xff]  }
 0x238   :  { %1920 = vmatprep.subr.bf16.mxu0 %v2331_v1 }
 0x239   :  { %1931 = vmatpush3.bf16.msra.mxu1 %v2106_v31 }
 0x23a   :  { %1932 = vmatprep.subr.bf16.mxu1 %v2331_v1 }
 0x23b   :  { %1921 = vmatpush3.bf16.msra.mxu0 %v2115_v41  ;;  %v2152_v41 = vld [vmem:[#allocation7 + $0xa8] sm:$0xff]  }
 0x23c   :  { %957 = vmatprep.subr.bf16.mxu0 %v2119_v56 }
 0x23d   :  { %1933 = vmatpush3.bf16.msra.mxu1 %v2108_v32  ;;  %v2144_v32 = vld [vmem:[#allocation7 + $0x88] sm:$0xff]  }
 0x23e   :  { %1934 = vmatprep.subr.bf16.mxu1 %v2331_v1 }
 0x241   :  { %1935 = vmatpush3.bf16.msra.mxu1 %v2110_v34  ;;  %v2147_v34 = vld [vmem:[#allocation5 + $0x98] sm:$0xff]  }
 0x242   :  { %1936 = vmatprep.subr.bf16.mxu1 %v2331_v1 }
 0x245   :  { %1937 = vmatpush3.bf16.msra.mxu1 %v2112_v36  ;;  %v2149_v36 = vld [vmem:[#allocation5 + $0xa0] sm:$0xff]  }
 0x246   :  { %1938 = vmatprep.subr.bf16.mxu1 %v2331_v1 }
 0x249   :  { %1939 = vmatpush3.bf16.msra.mxu1 %v2114_v39  ;;  %v2151_v39 = vld [vmem:[#allocation5 + $0xa8] sm:$0xff]  }
 0x24a   :  { %1940 = vmatprep.subr.bf16.mxu1 %v2331_v1 }
 0x24d   :  { %1941 = vmatpush3.bf16.msra.mxu1 %v2116_v42  ;;  %v2153_v42 = vld [vmem:[#allocation5 + $0xb0] sm:$0xff]  }
 0x24e   :  { %1946 = vmatprep.subr.bf16.mxu1 %v2331_v1 }
 0x303   :  { %v601_v46 = vpop.f32.mrb[4].mxu1 }
 0x304   :  { %v602_v47 = vadd.f32 %v601_v46, %v480_v44  ;;  %v603_v48 = vpop.f32.mrb[5].mxu1  ;;  %v2155_v44 = vld [vmem:[#allocation5 + $0xb8] sm:$0xff]   ;;  %v1720_v46 = vld [vmem:[%s2593_s2 + $0x4] sm:$0x3] }
 0x305   :  { %v604_v49 = vadd.f32 %v603_v48, %v484_v45  ;;  %v605_v50 = vpop.f32.mrb[6].mxu1  ;;  %v2156_v45 = vld [vmem:[#allocation7 + $0xb8] sm:$0xff]   ;;  %v874_v48 = vrot.slane %v1720_v46, %v2455_v40 }
 0x306   :  { %2205 = vtanh.f32 %v602_v47  ;;  %v606_v51 = vpop.f32.mrb[7].mxu1  ;;  %v870_v47 = vrot.slane %v1720_v46, %v2450_v38  ;;  %v2195_v46 = vld [vmem:[#allocation5 + $0xf8] sm:$0xff]  }
 0x307   :  { %2207 = vtanh.f32 %v604_v49 }
 0x310   :  { %v2206_v52 = vpop.eup %2205 }
 0x311   :  { %v2208_v53 = vpop.eup %2207  ;;  %v610_v54 = vpack.c.bf16 %v2206_v52, %v2206_v52 }
 0x312   :  { %v611_v55 = vpack.c.bf16 %v2208_v53, %v2208_v53 }
 0x313   :  { %1923 = vmatmul.mubr.bf16.vlgmr.msra.gmra.mrb[8].mxu0 %v610_v54 }
 0x314   :  { %1943 = vmatmul.mubr.bf16.vlgmr.msra.gmra.mrb[8].mxu1 %v611_v55  ;;  %989 = vmatprep.mubr.bf16.mxu0 %v2330_v0 }
 0x315   :  { %1962 = vmatprep.mubr.msk.bf16.mxu1 %vm2332_vm0, %v2331_v1  ;;  %958 = vmatpush1.bf16.msra.mxu0 %v2117_v57 }
 0x316   :  { %959 = vmatprep.subr.bf16.mxu0 %v2122_v58  ;;  %1947 = vmatpush3.bf16.msra.mxu1 %v2141_v28 }
 0x317   :  { %1948 = vmatprep.subr.bf16.mxu1 %v2331_v1 }
 0x319   :  { %960 = vmatpush1.bf16.msra.mxu0 %v2120_v59  ;;  %v2159_v59 = vld [vmem:[#allocation2 + $0x184] ss:$8 sps:$4 sm:$0xff]  }
 0x31a   :  { %961 = vmatprep.subr.bf16.mxu0 %v2125_v60  ;;  %1949 = vmatpush3.bf16.msra.mxu1 %v2143_v22  ;;  %v2157_v60 = vld [vmem:[#allocation2 + $0x180] ss:$8 sps:$4 sm:$0xff]  }
 0x31b   :  { %1950 = vmatprep.subr.bf16.mxu1 %v2331_v1  ;;  %v2181_v22 = vld [vmem:[#allocation5 + $0xc0] sm:$0xff]  }
 0x31d   :  { %962 = vmatpush1.bf16.msra.mxu0 %v2123_v61  ;;  %v2162_v61 = vld [vmem:[#allocation2 + $0x194] ss:$8 sps:$4 sm:$0xff]  }
 0x31e   :  { %963 = vmatprep.subr.bf16.mxu0 %v2128_v62  ;;  %1951 = vmatpush3.bf16.msra.mxu1 %v2145_v33  ;;  %v2160_v62 = vld [vmem:[#allocation2 + $0x190] ss:$8 sps:$4 sm:$0xff]   ;;  %v2183_v33 = vld [vmem:[#allocation5 + $0xc8] sm:$0xff]  }
 0x31f   :  { %1952 = vmatprep.subr.bf16.mxu1 %v2331_v1 }
 0x321   :  { %964 = vmatpush1.bf16.msra.mxu0 %v2126_v63  ;;  %v2165_v63 = vld [vmem:[#allocation2 + $0x1a4] ss:$8 sps:$4 sm:$0xff]  }
 0x322   :  { %965 = vmatprep.subr.bf16.mxu0 %v2131_v2  ;;  %1953 = vmatpush3.bf16.msra.mxu1 %v2147_v34  ;;  %v2163_v2 = vld [vmem:[#allocation2 + $0x1a0] ss:$8 sps:$4 sm:$0xff]  }
 0x323   :  { %1954 = vmatprep.subr.bf16.mxu1 %v2331_v1  ;;  %v2184_v34 = vld [vmem:[#allocation7 + $0xc8] sm:$0xff]  }
 0x325   :  { %966 = vmatpush1.bf16.msra.mxu0 %v2129_v3  ;;  %v2168_v3 = vld [vmem:[#allocation2 + $0x1b4] ss:$8 sps:$4 sm:$0xff]  }
 0x326   :  { %967 = vmatprep.subr.bf16.mxu0 %v2134_v4  ;;  %1955 = vmatpush3.bf16.msra.mxu1 %v2149_v36  ;;  %v2166_v4 = vld [vmem:[#allocation2 + $0x1b0] ss:$8 sps:$4 sm:$0xff]  }
 0x327   :  { %1956 = vmatprep.subr.bf16.mxu1 %v2331_v1  ;;  %v2187_v36 = vld [vmem:[#allocation5 + $0xd8] sm:$0xff]  }
 0x329   :  { %968 = vmatpush1.bf16.msra.mxu0 %v2132_v5  ;;  %v2169_v5 = vld [vmem:[#allocation2 + $0x1c0] ss:$8 sps:$4 sm:$0xff]  }
 0x32a   :  { %969 = vmatprep.subr.bf16.mxu0 %v2137_v6  ;;  %1957 = vmatpush3.bf16.msra.mxu1 %v2151_v39  ;;  %v2174_v6 = vld [vmem:[#allocation2 + $0x1d4] ss:$8 sps:$4 sm:$0xff]   ;;  %v2189_v39 = vld [vmem:[#allocation5 + $0xe0] sm:$0xff]  }
 0x32b   :  { %1958 = vmatprep.subr.bf16.mxu1 %v2331_v1 }
 0x32d   :  { %970 = vmatpush1.bf16.msra.mxu0 %v2135_v7  ;;  %v2172_v7 = vld [vmem:[#allocation2 + $0x1d0] ss:$8 sps:$4 sm:$0xff]  }
 0x32e   :  { %971 = vmatprep.subr.bf16.mxu0 %v2140_v8  ;;  %1959 = vmatpush3.bf16.msra.mxu1 %v2153_v42  ;;  %v2177_v8 = vld [vmem:[#allocation2 + $0x1e4] ss:$8 sps:$4 sm:$0xff]  }
 0x32f   :  { %1960 = vmatprep.subr.bf16.mxu1 %v2331_v1  ;;  %v2191_v42 = vld [vmem:[#allocation5 + $0xe8] sm:$0xff]  }
 0x331   :  { %972 = vmatpush1.bf16.msra.mxu0 %v2138_v9  ;;  %v2175_v9 = vld [vmem:[#allocation2 + $0x1e0] ss:$8 sps:$4 sm:$0xff]  }
 0x332   :  { %1966 = vmatprep.subr.bf16.mxu0 %v2331_v1  ;;  %1961 = vmatpush3.bf16.msra.mxu1 %v2155_v44  ;;  %v2193_v44 = vld [vmem:[#allocation5 + $0xf0] sm:$0xff]  }
 0x333   :  { %1347 = vmatprep.subr.bf16.mxu1 %v2159_v59 }
 0x3e6   :  { %v719_v11 = vpop.f32.mrb[8].mxu0 }
 0x3e7   :  { %v720_v12 = vadd.f32 %v1701_v10, %v719_v11  ;;  %v1924_v13 = vpop.f32.mrb[9].mxu0  ;;  %v833_v14 = vpop.f32.mrb[8].mxu1  ;;  %v2180_v10 = vld [vmem:[#allocation2 + $0x1f4] ss:$8 sps:$4 sm:$0xff]   ;;  %v2178_v11 = vld [vmem:[#allocation2 + $0x1f0] ss:$8 sps:$4 sm:$0xff]  }
 0x3e8   :  { %v722_v15 = vpop.f32.mrb[10].mxu0  ;;  %v1944_v16 = vpop.f32.mrb[9].mxu1  ;;  %v834_v26 = vadd.f32 %v1711_v23, %v833_v14 }
 0x3e9   :  { %2209 = vtanh.f32 %v720_v12  ;;  %v1925_v17 = vpop.f32.mrb[11].mxu0  ;;  %v836_v18 = vpop.f32.mrb[10].mxu1  ;;  %v1738_v12 = vld [vmem:[%s2595_s4 + $0x2] ss:$0 sm:$0xff] }
 0x3ea   :  { %v1945_v19 = vpop.f32.mrb[11].mxu1 }
 0x3f3   :  { %v2210_v20 = vpop.eup %2209 }
 0x3f4   :  { %v839_v21 = vmul.f32 1.442695, %v2210_v20  ;;  %843 = vadd.xlane.f32.xlu0 %v2210_v20 }
 0x3f6   :  { %2211 = vpow2.f32 %v839_v21 }
 0x400   :  { %v2212_v24 = vpop.eup %2211 }
 0x401   :  { %v841_v27 = vmul.f32 %v2212_v24, %v2470_v25  ;;  %v2146_v25 = vld [vmem:[#allocation7 + $0x90] sm:$0xff]  }
 0x403   :  { %v2507_v29 = vadd.f32 %v841_v27, %v834_v26  ;;  %v1748_v26 = vld [vmem:[%s2597_s6 + $0x2] ss:$0 sm:$0xff] }
 0x405   :  { %v846_v31 = vpack.c.bf16 %v2507_v29, %v2507_v29 }
 0x407   :  { %990 = vmatmul.mubr.bf16.vlgmr.msra.gmra.mrb[12].mxu0 %v846_v31 }
 0x408   :  { %1967 = vmatpush3.bf16.msra.mxu0 %v2142_v30  ;;  %1982 = vmatprep.mubr.msk.bf16.mxu0 %vm2332_vm0, %v2331_v1 }
 0x409   :  { %1968 = vmatprep.subr.bf16.mxu0 %v2331_v1 }
 0x40c   :  { %1969 = vmatpush3.bf16.msra.mxu0 %v2144_v32  ;;  %v2182_v32 = vld [vmem:[#allocation7 + $0xc0] sm:$0xff]  }
 0x40d   :  { %1970 = vmatprep.subr.bf16.mxu0 %v2331_v1 }
 0x410   :  { %1971 = vmatpush3.bf16.msra.mxu0 %v2146_v25 }
 0x411   :  { %1972 = vmatprep.subr.bf16.mxu0 %v2331_v1 }
 0x414   :  { %1973 = vmatpush3.bf16.msra.mxu0 %v2148_v35  ;;  %v2185_v35 = vld [vmem:[#allocation5 + $0xd0] sm:$0xff]  }
 0x415   :  { %1974 = vmatprep.subr.bf16.mxu0 %v2331_v1 }
 0x418   :  { %1975 = vmatpush3.bf16.msra.mxu0 %v2150_v37  ;;  %v2188_v37 = vld [vmem:[#allocation7 + $0xd8] sm:$0xff]  }
 0x419   :  { %1976 = vmatprep.subr.bf16.mxu0 %v2331_v1 }
 0x41c   :  { %1977 = vmatpush3.bf16.msra.mxu0 %v2152_v41  ;;  %v2190_v41 = vld [vmem:[#allocation7 + $0xe0] sm:$0xff]  }
 0x41d   :  { %1978 = vmatprep.subr.bf16.mxu0 %v2331_v1 }
 0x420   :  { %1979 = vmatpush3.bf16.msra.mxu0 %v2154_v43  ;;  %v2192_v43 = vld [vmem:[#allocation7 + $0xe8] sm:$0xff]  }
 0x421   :  { %1980 = vmatprep.subr.bf16.mxu0 %v2331_v1 }
 0x424   :  { %1981 = vmatpush3.bf16.msra.mxu0 %v2156_v45  ;;  %v2194_v45 = vld [vmem:[#allocation7 + $0xf0] sm:$0xff]  }
 0x425   :  { %1986 = vmatprep.subr.bf16.mxu0 %v2331_v1 }
 0x4da   :  { %v991_v49 = vpop.f32.mrb[12].mxu0 }
 0x4db   :  { %v992_v50 = vadd.f32 %v991_v49, %v870_v47  ;;  %v993_v51 = vpop.f32.mrb[13].mxu0  ;;  %v2196_v47 = vld [vmem:[#allocation7 + $0xf8] sm:$0xff]  }
 0x4dc   :  { %v994_v52 = vadd.f32 %v993_v51, %v874_v48  ;;  %v995_v53 = vpop.f32.mrb[14].mxu0  ;;  %v1757_v48 = vld [vmem:[%s2593_s2 + $0x6] sm:$0x3] }
 0x4dd   :  { %2213 = vtanh.f32 %v992_v50  ;;  %v996_v54 = vpop.f32.mrb[15].mxu0  ;;  %v1260_v49 = vrot.slane %v1757_v48, %v2450_v38  ;;  %v1264_v50 = vrot.slane %v1757_v48, %v2455_v40  ;;  %v1775_v38 = vld [vmem:[%s2595_s4 + $0x3] ss:$0 sm:$0xff]  ;;  %s2333_s4 = smov [#allocation8]  }
 0x4de   :  { %2215 = vtanh.f32 %v994_v52  ;;  %s1635_s20 = sshll.u32 %s2333_s4, 4  ;;  %s1636_s20 = int_to_ptr.vmem [resolvable:$true] %s1635_s20 }
 0x4df   :  { %s2295_s5 = scalar_lea.vmem %s1636_s20, 128  ;;  %p2300_p11 = scmp.lt.s32.totalorder %s1636_s20, %s1636_s20 }
 0x4e0   :  { %p2296_p10 = scmp.ne.s32.totalorder %s1636_s20, %s2295_s5  ;;  %p2301_p12 = scmp.lt.s32.totalorder %s2295_s5, %s2295_s5 }
 0x4e2   :  { %p2302_p13 = por %p2301_p12, %p2300_p11 }
 0x4e4   :  { %p2303_p0 = pnand %p2302_p13, %p2296_p10 }
 0x4e7   :  { %v2214_v55 = vpop.eup %2213 }
 0x4e8   :  { %v2216_v56 = vpop.eup %2215  ;;  %v1000_v57 = vpack.c.bf16 %v2214_v55, %v2214_v55 }
 0x4e9   :  { %v1001_v58 = vpack.c.bf16 %v2216_v56, %v2216_v56 }
 0x4ea   :  { %1963 = vmatmul.mubr.bf16.vlgmr.msra.gmra.mrb[12].mxu1 %v1000_v57 }
 0x4eb   :  { %1983 = vmatmul.mubr.bf16.vlgmr.msra.gmra.mrb[16].mxu0 %v1001_v58  ;;  %1379 = vmatprep.mubr.bf16.mxu1 %v2330_v0  ;;  %v2171_v0 = vld [vmem:[#allocation2 + $0x1c4] ss:$8 sps:$4 sm:$0xff]  }
 0x4ec   :  { %2002 = vmatprep.mubr.msk.bf16.mxu0 %vm2332_vm0, %v2331_v1  ;;  %1348 = vmatpush1.bf16.msra.mxu1 %v2157_v60 }
 0x4ed   :  { %1349 = vmatprep.subr.bf16.mxu1 %v2162_v61  ;;  %1987 = vmatpush3.bf16.msra.mxu0 %v2181_v22 }
 0x4ee   :  { %1988 = vmatprep.subr.bf16.mxu0 %v2331_v1 }
 0x4f0   :  { %1350 = vmatpush1.bf16.msra.mxu1 %v2160_v62 }
 0x4f1   :  { %1351 = vmatprep.subr.bf16.mxu1 %v2165_v63  ;;  %1989 = vmatpush3.bf16.msra.mxu0 %v2183_v33 }
 0x4f2   :  { %1990 = vmatprep.subr.bf16.mxu0 %v2331_v1 }
 0x4f4   :  { %1352 = vmatpush1.bf16.msra.mxu1 %v2163_v2 }
 0x4f5   :  { %1353 = vmatprep.subr.bf16.mxu1 %v2168_v3  ;;  %1991 = vmatpush3.bf16.msra.mxu0 %v2185_v35 }
 0x4f6   :  { %1992 = vmatprep.subr.bf16.mxu0 %v2331_v1 }
 0x4f8   :  { %1354 = vmatpush1.bf16.msra.mxu1 %v2166_v4 }
 0x4f9   :  { %1355 = vmatprep.subr.bf16.mxu1 %v2171_v0  ;;  %1993 = vmatpush3.bf16.msra.mxu0 %v2187_v36 }
 0x4fa   :  { %1994 = vmatprep.subr.bf16.mxu0 %v2331_v1 }
 0x4fc   :  { %1356 = vmatpush1.bf16.msra.mxu1 %v2169_v5 }
 0x4fd   :  { %1357 = vmatprep.subr.bf16.mxu1 %v2174_v6  ;;  %1995 = vmatpush3.bf16.msra.mxu0 %v2189_v39 }
 0x4fe   :  { %1996 = vmatprep.subr.bf16.mxu0 %v2331_v1 }
 0x500   :  { %1358 = vmatpush1.bf16.msra.mxu1 %v2172_v7  ;;  %v1785_v7 = vld [vmem:[%s2597_s6 + $0x3] ss:$0 sm:$0xff] }
 0x501   :  { %1359 = vmatprep.subr.bf16.mxu1 %v2177_v8  ;;  %1997 = vmatpush3.bf16.msra.mxu0 %v2191_v42 }
 0x502   :  { %1998 = vmatprep.subr.bf16.mxu0 %v2331_v1 }
 0x504   :  { %1360 = vmatpush1.bf16.msra.mxu1 %v2175_v9 }
 0x505   :  { %1361 = vmatprep.subr.bf16.mxu1 %v2180_v10  ;;  %1999 = vmatpush3.bf16.msra.mxu0 %v2193_v44 }
 0x506   :  { %2000 = vmatprep.subr.bf16.mxu0 %v2331_v1 }
 0x508   :  { %1362 = vmatpush1.bf16.msra.mxu1 %v2178_v11 }
 0x509   :  { %2006 = vmatprep.subr.bf16.mxu1 %v2331_v1  ;;  %2001 = vmatpush3.bf16.msra.mxu0 %v2195_v46 }
 0x5bd   :  { %v1109_v13 = vpop.f32.mrb[12].mxu1 }
 0x5be   :  { %v1110_v14 = vadd.f32 %v1738_v12, %v1109_v13  ;;  %v1964_v15 = vpop.f32.mrb[13].mxu1  ;;  %v1223_v16 = vpop.f32.mrb[16].mxu0 }
 0x5bf   :  { %v1112_v17 = vpop.f32.mrb[14].mxu1  ;;  %v1984_v18 = vpop.f32.mrb[17].mxu0  ;;  %v1224_v28 = vadd.f32 %v1748_v26, %v1223_v16 }
 0x5c0   :  { %2217 = vtanh.f32 %v1110_v14  ;;  %v1965_v19 = vpop.f32.mrb[15].mxu1  ;;  %v1226_v20 = vpop.f32.mrb[18].mxu0 }
 0x5c1   :  { %v1985_v21 = vpop.f32.mrb[19].mxu0 }
 0x5ca   :  { %v2218_v23 = vpop.eup %2217 }
 0x5cb   :  { %v1229_v24 = vmul.f32 1.442695, %v2218_v23  ;;  %1233 = vadd.xlane.f32.xlu1 %v2218_v23 }
 0x5cd   :  { %2219 = vpow2.f32 %v1229_v24 }
 0x5d7   :  { %v2220_v27 = vpop.eup %2219 }
 0x5d8   :  { %v1231_v30 = vmul.f32 %v2220_v27, %v2507_v29  ;;  %v2186_v29 = vld [vmem:[#allocation7 + $0xd0] sm:$0xff]  }
 0x5da   :  { %v2544_v31 = vadd.f32 %v1231_v30, %v1224_v28 }
 0x5dc   :  { %v1236_v25 = vpack.c.bf16 %v2544_v31, %v2544_v31 }
 0x5de   :  { %1380 = vmatmul.mubr.bf16.vlgmr.msra.gmra.mrb[16].mxu1 %v1236_v25 }
 0x5df   :  { %2007 = vmatpush3.bf16.msra.mxu1 %v2182_v32  ;;  %2022 = vmatprep.mubr.msk.bf16.mxu1 %vm2332_vm0, %v2331_v1 }
 0x5e0   :  { %2008 = vmatprep.subr.bf16.mxu1 %v2331_v1 }
 0x5e3   :  { %2009 = vmatpush3.bf16.msra.mxu1 %v2184_v34 }
 0x5e4   :  { %2010 = vmatprep.subr.bf16.mxu1 %v2331_v1 }
 0x5e7   :  { %2011 = vmatpush3.bf16.msra.mxu1 %v2186_v29 }
 0x5e8   :  { %2012 = vmatprep.subr.bf16.mxu1 %v2331_v1 }
 0x5eb   :  { %2013 = vmatpush3.bf16.msra.mxu1 %v2188_v37 }
 0x5ec   :  { %2014 = vmatprep.subr.bf16.mxu1 %v2331_v1 }
 0x5ef   :  { %2015 = vmatpush3.bf16.msra.mxu1 %v2190_v41 }
 0x5f0   :  { %2016 = vmatprep.subr.bf16.mxu1 %v2331_v1 }
 0x5f3   :  { %2017 = vmatpush3.bf16.msra.mxu1 %v2192_v43 }
 0x5f4   :  { %2018 = vmatprep.subr.bf16.mxu1 %v2331_v1 }
 0x5f7   :  { %2019 = vmatpush3.bf16.msra.mxu1 %v2194_v45 }
 0x5f8   :  { %2020 = vmatprep.subr.bf16.mxu1 %v2331_v1 }
 0x5fb   :  { %2021 = vmatpush3.bf16.msra.mxu1 %v2196_v47 }
 0x6b1   :  { %v1381_v51 = vpop.f32.mrb[16].mxu1 }
 0x6b2   :  { %v1382_v52 = vadd.f32 %v1381_v51, %v1260_v49  ;;  %v1383_v53 = vpop.f32.mrb[17].mxu1 }
 0x6b3   :  { %v1384_v54 = vadd.f32 %v1383_v53, %v1264_v50  ;;  %v1385_v55 = vpop.f32.mrb[18].mxu1 }
 0x6b4   :  { %2221 = vtanh.f32 %v1382_v52  ;;  %v1386_v56 = vpop.f32.mrb[19].mxu1 }
 0x6b5   :  { %2223 = vtanh.f32 %v1384_v54 }
 0x6be   :  { %v2222_v1 = vpop.eup %2221 }
 0x6bf   :  { %v2224_v57 = vpop.eup %2223  ;;  %v1390_v58 = vpack.c.bf16 %v2222_v1, %v2222_v1 }
 0x6c0   :  { %v1391_v59 = vpack.c.bf16 %v2224_v57, %v2224_v57 }
 0x6c1   :  { %2003 = vmatmul.mubr.bf16.vlgmr.msra.gmra.mrb[20].mxu0 %v1390_v58 }
 0x6c2   :  { %2023 = vmatmul.mubr.bf16.vlgmr.msra.gmra.mrb[20].mxu1 %v1391_v59 }
 0x794   :  { %v1499_v60 = vpop.f32.mrb[20].mxu0 }
 0x795   :  { %v1500_v40 = vadd.f32 %v1775_v38, %v1499_v60  ;;  %v2004_v61 = vpop.f32.mrb[21].mxu0  ;;  %v1613_v62 = vpop.f32.mrb[20].mxu1 }
 0x796   :  { %v1502_v63 = vpop.f32.mrb[22].mxu0  ;;  %v2024_v2 = vpop.f32.mrb[21].mxu1  ;;  %v1614_v9 = vadd.f32 %v1785_v7, %v1613_v62 }
 0x797   :  { %2225 = vtanh.f32 %v1500_v40  ;;  %v2005_v3 = vpop.f32.mrb[23].mxu0  ;;  %v1616_v4 = vpop.f32.mrb[22].mxu1 }
 0x798   :  { %v2025_v0 = vpop.f32.mrb[23].mxu1 }
 0x7a1   :  { %v2226_v5 = vpop.eup %2225 }
 0x7a2   :  { %v1619_v6 = vmul.f32 1.442695, %v2226_v5  ;;  %1623 = vadd.xlane.f32.xlu1 %v2226_v5 }
 0x7a4   :  { %2227 = vpow2.f32 %v1619_v6 }
 0x7ae   :  { %v2228_v8 = vpop.eup %2227 }
 0x7af   :  { %v1621_v10 = vmul.f32 %v2228_v8, %v2544_v31 }
 0x7b1   :  { %v1622_v11 = vadd.f32 %v1621_v10, %v1614_v9 }
 0x7b3   :  { %1626 = vst [vmem:[#allocation8] sm:$0xff] %v1622_v11 }
 0x7b4   :  { %2306 = shalt.err (!%p2303_p0)
}
 0x7b5   :  { %s2307_s6 = scalar_lea.hbm %s2598_s7, 128 }
 0x7b6   :  { %p2308_p1 = scmp.ne.s32.totalorder %s2598_s7, %s2307_s6  ;;  %p2311_p2 = scmp.lt.u32.totalorder %s2307_s6, %s2598_s7 }
 0x7b8   :  { %p2313_p3 = pnand %p2311_p2, %p2308_p1 }
 0x7ba   :  { %2316 = shalt.err (!%p2313_p3)
}
 0x7bb   :  { %1638 = dma.vmem_to_hbm [thread:$0]  %s1636_s20, 128, %s2598_s7, [#allocation4]   ;;  %v454_v12 = vpop.xlane.xlu0 %453  ;;  %v1234_v14 = vpop.xlane.xlu1 %1233  ;;  %vm1627_vm1 = vcmask 64512  }
 0x7bf   :  { %v844_v13 = vpop.xlane.xlu0 %843 }
 0x7c0   :  { %v845_v15 = vadd.f32 %v844_v13, %v454_v12 }
 0x7c2   :  { %v1235_v16 = vadd.f32 %v1234_v14, %v845_v15 }
 0x82f   :  { %v1624_v17 = vpop.xlane.xlu1 %1623 }
 0x830   :  { %v1625_v18 = vadd.f32 %v1624_v17, %v1235_v16 }
 0x832   :  { %1628 = vst.msk [vmem:[%s2599_s8] sm:$0xff] %vm1627_vm1, %v1625_v18 }
 0x833   :  { %2321 = dma.done.wait [#allocation4], 128  }
 0x834   :  { %2322 = vsyncadd [#allocation4], 4294967168 }
 0x835   :  { %1646 = vsyncpa [#allocation3], 1 }
 0x836   :  { %1647 = vsyncpa [#allocation6], 1 }
 0x837   :  { %1648 = vsyncpa [#allocation4], 1 }

</bundles_post_ra>
